<compile_context>
chip_gen: v7x
topology: tpu7x:2x2x1
jax: 0.10.0
libtpu: 0.0.40
codegen_flags: <defaults>
</compile_context>

<pallas_src>
import numpy as np
import jax
import jax.numpy as jnp
from jax import lax
from jax.experimental import pallas as pl
from jax.experimental.pallas import tpu as pltpu

# Fixed (non-trainable) masks from the module.
_MASK_ZZ_12 = np.array(
    [1.0, -1.0, -1.0, 1.0, 1.0, -1.0, -1.0, 1.0,
     1.0, -1.0, -1.0, 1.0, 1.0, -1.0, -1.0, 1.0], dtype=np.float32)
_MASK_ZZ_34 = np.array(
    [-1.0, -1.0, -1.0, -1.0, 1.0, 1.0, 1.0, 1.0,
     -1.0, -1.0, -1.0, -1.0, 1.0, 1.0, 1.0, 1.0], dtype=np.float32)

MASK_ZZ_12 = jnp.asarray(_MASK_ZZ_12)
MASK_ZZ_34 = jnp.asarray(_MASK_ZZ_34)


def _build_contraction_matrix() -> jnp.ndarray:
    """(128, 16) block-diagonal +/-1 matrix.

    Row j*16+i, column 2*j+k holds mask_k[i] (k=0 -> ZZ_12, k=1 -> ZZ_34), so
    for an input row packing 8 samples x 16 states, x_row @ W packs the 8
    samples' two raw expectation values into 16 output lanes.
    """
    w = np.zeros((128, 16), dtype=np.float32)
    for j in range(8):
        w[j * 16:(j + 1) * 16, 2 * j + 0] = _MASK_ZZ_12
        w[j * 16:(j + 1) * 16, 2 * j + 1] = _MASK_ZZ_34
    return jnp.asarray(w)


_CONTRACT_W = _build_contraction_matrix()


def _exp_val_kernel(x_ref, w_ref, hw_ref, o_ref):
    # x_ref:  (TR, 128)  8 samples per row, 16 states each (lane-dense batch).
    # w_ref:  (128, 16)  block-diagonal +/-1 contraction matrix.
    # hw_ref: (2,)       SMEM scalars = 0.5 * weights.
    # o_ref:  (TR, 16)   8 samples x 2 expectation values per row.
    x = x_ref[...].astype(jnp.float32)

    # Per-sample masked sums as one MXU contraction (exact-enough f32 via
    # HIGHEST multi-pass); VPU/XLU slots stay free on this HBM-bound kernel.
    e = jnp.dot(x, w_ref[...],
                preferred_element_type=jnp.float32,
                precision=lax.Precision.HIGHEST)          # (TR, 16)

    # weights * ((e + 1) / 2) == half_w * e + half_w  (single scale + bias).
    lane = lax.broadcasted_iota(jnp.int32, (1, 16), 1)
    hw = jnp.where(lane % 2 == 0, hw_ref[0], hw_ref[1])   # [hw0, hw1] * 8
    o_ref[...] = e * hw + hw                              # one full-block store


def _pick_tile_rows(n_rows: int, block_rows: int) -> int:
    """Rows (8 samples each) per grid step."""
    if n_rows <= 8:
        return n_rows                       # single block == full extent
    tr = min(block_rows, n_rows)
    if tr >= n_rows:
        # Whole batch would be one grid step: split in two so the "parallel"
        # grid axis can shard across v7x's two TensorCores.
        tr = (n_rows + 1) // 2
    tr = max(8, ((tr + 7) // 8) * 8)        # sublane-aligned tile
    if tr >= n_rows:
        tr = n_rows
    return tr


def _xla_epilogue(x, weights):
    e12 = jnp.sum(MASK_ZZ_12 * x, axis=1, keepdims=True)
    e34 = jnp.sum(MASK_ZZ_34 * x, axis=1, keepdims=True)
    return (weights.astype(jnp.float32) *
            ((jnp.concatenate([e12, e34], axis=1) + 1.0) / 2.0))


def exp_val_layer_forward(x, weights, *, block_rows=4096, small_batch_xla=False):
    """x: (B, 16) or (16,) probabilities (f32 or bf16); weights: (2,).

    Returns (B, 2) (or (2,) for 1-D input), float32.
    """
    squeeze = x.ndim == 1
    if squeeze:
        x = x[None, :]
    B, n_states = x.shape
    assert n_states == 16, "exp_val_layer expects 16 basis-state probabilities"

    if small_batch_xla and B < 1024:
        # Tiny RL batches: let XLA fuse the 3-op epilogue into x's producer.
        out = _xla_epilogue(x.astype(jnp.float32), weights)
        return out[0] if squeeze else out

    half_w = (0.5 * weights.astype(jnp.float32)).reshape(2)

    # Native row-major consumption: (B,16) -> (B/8, 128) is a layout-preserving
    # (free) reshape — no wrapper transpose, no pad-to-tile copy. Only a batch
    # that is not a multiple of 8 needs a tiny (<8 row) pad.
    b8 = ((B + 7) // 8) * 8
    xp = x if b8 == B else jnp.pad(x, ((0, b8 - B), (0, 0)))
    n_rows = b8 // 8
    xr = xp.reshape(n_rows, 128)

    tr = _pick_tile_rows(n_rows, block_rows)
    # Partial last block is fine: OOB rows only pollute output rows >= B,
    # which are sliced off below.
    grid = (pl.cdiv(n_rows, tr),)

    out_rows = pl.pallas_call(
        _exp_val_kernel,
        out_shape=jax.ShapeDtypeStruct((n_rows, 16), jnp.float32),
        grid=grid,
        in_specs=[
            pl.BlockSpec((tr, 128), lambda i: (i, 0)),
            pl.BlockSpec((128, 16), lambda i: (0, 0)),
            pl.BlockSpec(memory_space=pltpu.MemorySpace.SMEM),
        ],
        out_specs=pl.BlockSpec((tr, 16), lambda i: (i, 0)),
        compiler_params=pltpu.CompilerParams(
            dimension_semantics=("parallel",),
            vmem_limit_bytes=32 * 1024 * 1024,
        ),
    )(xr, _CONTRACT_W, half_w)

    out = out_rows.reshape(b8, 2)           # free reshape back to (samples, 2)
    if b8 != B:
        out = out[:B]
    return out[0] if squeeze else out


def _reference(x, weights):
    if x.ndim == 1:
        x = x[None, :]
    return _xla_epilogue(x.astype(jnp.float32), weights)


if __name__ == "__main__":
    key = jax.random.PRNGKey(0)
    kx, kw, kx2, kx3 = jax.random.split(key, 4)

    # Deterministic parameter init matching torch.nn.init.uniform_(w, 35, 40).
    weights = jax.random.uniform(kw, (2,), jnp.float32, minval=35.0, maxval=40.0)

    # Small batch of "quantum state probability" vectors, shape (B, 16).
    B = 8
    x = jax.nn.softmax(jax.random.normal(kx, (B, 16), jnp.float32), axis=-1)
    out = jax.block_until_ready(exp_val_layer_forward(x, weights))
    ref = _reference(x, weights)
    assert out.shape == (B, 2)
    assert jnp.allclose(out, ref, atol=1e-4, rtol=1e-5)

    # 1-D (single sample) path.
    out1 = jax.block_until_ready(exp_val_layer_forward(x[0], weights))
    assert out1.shape == (2,)
    assert jnp.allclose(out1, ref[0], atol=1e-4, rtol=1e-5)

    # Non-multiple-of-8 batch, small tile: multi-step grid + partial last block.
    B2 = 300
    x2 = jax.nn.softmax(jax.random.normal(kx2, (B2, 16), jnp.float32), axis=-1)
    out2 = jax.block_until_ready(exp_val_layer_forward(x2, weights, block_rows=8))
    ref2 = _reference(x2, weights)
    assert out2.shape == (B2, 2)
    assert jnp.allclose(out2, ref2, atol=1e-4, rtol=1e-5)

    # Default tiling path: whole batch fits one block -> split into a 2-step
    # "parallel" grid (megacore sharding on v7x).
    B3 = 512
    x3 = jax.nn.softmax(jax.random.normal(kx3, (B3, 16), jnp.float32), axis=-1)
    ref3 = _reference(x3, weights)
    out3 = jax.block_until_ready(exp_val_layer_forward(x3, weights))
    assert jnp.allclose(out3, ref3, atol=1e-4, rtol=1e-5)

    # bf16 input (halves HBM read traffic); looser tolerance vs f32 reference.
    out3b = jax.block_until_ready(
        exp_val_layer_forward(x3.astype(jnp.bfloat16), weights))
    assert jnp.allclose(out3b, ref3, atol=2e-1, rtol=0.0)

    print("KERNEL_OK")
</pallas_src>

<mosaic_0001>
module attributes {stable_mosaic.version = 11 : i64} {
  func.func @_exp_val_kernel(%arg0: i32, %arg1: memref<1x128xf32, #tpu.memory_space<vmem>>, %arg2: memref<128x16xf32, #tpu.memory_space<vmem>>, %arg3: memref<2xf32, #tpu.memory_space<smem>>, %arg4: memref<1x16xf32, #tpu.memory_space<vmem>>) attributes {dimension_semantics = [#tpu.dimension_semantics<parallel>], iteration_bounds = array<i64: 1>, scalar_prefetch = 0 : i64, scratch_operands = 0 : i64, tpu.core_type = #tpu.core_type<tc>, window_params = [{transform_indices = @transform_0, window_bounds = array<i64: 1, 128>}, {pipeline_mode = #tpu.pipeline_mode<synchronous>, transform_indices = @transform_1, window_bounds = array<i64: 128, 16>}, {transform_indices = @transform_2, window_bounds = array<i64: 2>}, {transform_indices = @transform_3, window_bounds = array<i64: 1, 16>}]} {
    %c0 = arith.constant 0 : index
    %c0_0 = arith.constant 0 : index
    %0 = vector.load %arg1[%c0, %c0_0] : memref<1x128xf32, #tpu.memory_space<vmem>>, vector<1x128xf32>
    %c0_1 = arith.constant 0 : index
    %c0_2 = arith.constant 0 : index
    %1 = vector.load %arg2[%c0_1, %c0_2] : memref<128x16xf32, #tpu.memory_space<vmem>>, vector<128x16xf32>
    %cst = arith.constant dense<0.000000e+00> : vector<1x16xf32>
    %2 = tpu.matmul %0, %1, %cst {dimension_numbers = #tpu.dot_dimension_numbers<[1], [0], [0], [1], [0, 0, 1, 1], [], []>, precision = #tpu.contract_precision<fp32>} : vector<1x128xf32>, vector<128x16xf32>, vector<1x16xf32> -> vector<1x16xf32>
    %3 = tpu.iota {dimensions = array<i32: 1>} : vector<1x16xi32>
    %c2_i32 = arith.constant 2 : i32
    %c0_i32 = arith.constant 0 : i32
    %4 = arith.cmpi eq, %c2_i32, %c0_i32 : i32
    %c1_i32 = arith.constant 1 : i32
    %5 = arith.select %4, %c1_i32, %c2_i32 : i32
    %6 = vector.broadcast %5 : i32 to vector<1x16xi32>
    %7 = arith.remsi %3, %6 : vector<1x16xi32>
    %c0_i32_3 = arith.constant 0 : i32
    %8 = vector.broadcast %c0_i32_3 : i32 to vector<1x16xi32>
    %9 = arith.cmpi ne, %7, %8 : vector<1x16xi32>
    %c0_i32_4 = arith.constant 0 : i32
    %10 = vector.broadcast %c0_i32_4 : i32 to vector<1x16xi32>
    %11 = arith.cmpi slt, %7, %10 : vector<1x16xi32>
    %c0_i32_5 = arith.constant 0 : i32
    %12 = arith.cmpi slt, %5, %c0_i32_5 : i32
    %13 = vector.broadcast %12 : i1 to vector<1x16xi1>
    %14 = vector.broadcast %13 : vector<1x16xi1> to vector<1x16xi1>
    %15 = arith.xori %11, %14 : vector<1x16xi1>
    %16 = arith.andi %15, %9 : vector<1x16xi1>
    %17 = vector.broadcast %5 : i32 to vector<1x16xi32>
    %18 = arith.addi %7, %17 : vector<1x16xi32>
    %19 = arith.select %16, %18, %7 : vector<1x16xi1>, vector<1x16xi32>
    %c0_i32_6 = arith.constant 0 : i32
    %20 = vector.broadcast %c0_i32_6 : i32 to vector<1x16xi32>
    %21 = arith.cmpi eq, %19, %20 : vector<1x16xi32>
    %c0_7 = arith.constant 0 : index
    %22 = memref.load %arg3[%c0_7] : memref<2xf32, #tpu.memory_space<smem>>
    %c1 = arith.constant 1 : index
    %23 = memref.load %arg3[%c1] : memref<2xf32, #tpu.memory_space<smem>>
    %24 = vector.broadcast %22 : f32 to vector<1x16xf32>
    %25 = vector.broadcast %23 : f32 to vector<1x16xf32>
    %26 = arith.select %21, %24, %25 : vector<1x16xi1>, vector<1x16xf32>
    %27 = arith.mulf %2, %26 : vector<1x16xf32>
    %28 = arith.addf %27, %26 : vector<1x16xf32>
    %c0_8 = arith.constant 0 : index
    %c0_9 = arith.constant 0 : index
    %29 = vector.load %arg4[%c0_8, %c0_9] : memref<1x16xf32, #tpu.memory_space<vmem>>, vector<1x16xf32>
    tpu.vector_store %arg4[%c0_8, %c0_9], %28 {strides = array<i32>} : memref<1x16xf32, #tpu.memory_space<vmem>>, vector<1x16xf32>,
    return
  }
  func.func @transform_0(%arg0: i32) -> (i32, i32) {
    %c0_i32 = arith.constant 0 : i32
    %c0_i32_0 = arith.constant 0 : i32
    return %arg0, %c0_i32 : i32, i32
  }
  func.func @transform_1(%arg0: i32) -> (i32, i32) {
    %c0_i32 = arith.constant 0 : i32
    %c0_i32_0 = arith.constant 0 : i32
    %c0_i32_1 = arith.constant 0 : i32
    return %c0_i32, %c0_i32_0 : i32, i32
  }
  func.func @transform_2(%arg0: i32) -> i32 {
    %c0_i32 = arith.constant 0 : i32
    %c0_i32_0 = arith.constant 0 : i32
    return %c0_i32 : i32
  }
  func.func @transform_3(%arg0: i32) -> (i32, i32) {
    %c0_i32 = arith.constant 0 : i32
    %c0_i32_0 = arith.constant 0 : i32
    return %arg0, %c0_i32 : i32, i32
  }
}

</mosaic_0001>

<bundles_post_ra>
// kernel: tpu_custom_call.1
= control target key start
LH: loop header
LB: loop body
LE: loop exit
PB: predicated region body
PF: predicated region fallthrough
CT: control target
= control target key end

     0   :  { %8 = vsyncpa [#allocation4], 0  ;;  %s1572_s0 = inlined_call_operand.vmem [shape: f32[1,128], index: 0, kind: input, shape index: {}]   ;;  %s1573_s1 = inlined_call_operand.vmem [shape: f32[128,16], index: 1, kind: input, shape index: {}]   ;;  %s1574_s2 = inlined_call_operand.vmem [shape: f32[2], index: 2, kind: input, shape index: {}]   ;;  %s1575_s3 = inlined_call_operand.hbm [shape: f32[1,16], index: 3, kind: output, shape index: {}]  }
   0x1   :  { %9 = vsyncpa [#allocation3], 0  ;;  %s20_s14 = sshll.u32 %s1574_s2, 4  ;;  %s21_s14 = int_to_ptr.vmem [resolvable:$true] %s20_s14 }
   0x2   :  { %s1196_s15 = scalar_lea.vmem %s21_s14, 16  ;;  %p1201_p1 = scmp.lt.s32.totalorder %s21_s14, %s21_s14 }
   0x3   :  { %p1197_p0 = scmp.ne.s32.totalorder %s21_s14, %s1196_s15  ;;  %p1202_p2 = scmp.lt.s32.totalorder %s1196_s15, %s1196_s15 }
   0x5   :  { %p1203_p3 = por %p1202_p2, %p1201_p1 }
   0x7   :  { %p1204_p4 = pnand %p1203_p3, %p1197_p0 }
   0x9   :  { %1207 = shalt.err (!%p1204_p4)
}
   0xa   :  { %s1234_s16 = smov [#allocation2]  }
   0xb   :  { %23 = dma.vmem_to_smem %s21_s14, 16, %s1234_s16, [#allocation4]  }
   0xc   :  { %1230 = dma.done.wait [#allocation4], 16  }
   0xd   :  { %1231 = vsyncadd [#allocation4], 4294967280 }
   0xe   :  { %27 = sfence }
   0xf   :  { %v29_v0 = vld [vmem:[%s1573_s1] sm:$0xff]  ;;  %v30_v1 = vld [vmem:[%s1573_s1 + $0x8] sm:$0xff]  ;;  %v31_v2 = vld [vmem:[%s1573_s1 + $0x10] sm:$0xff]  ;;  %v1235_v3 = vmov 0.0|0.0   ;;  %vm1236_vm0 = vmmov 0   ;;  %v1237_v11 = vmov 0.0  }
  0x10   :  { %1038 = vmatprep.subr.bf16.mxu1 %v1235_v3  ;;  %1110 = vmatprep.subr.bf16.mxu0 %v1235_v3  ;;  %v46_v4 = vand.u32 4294901760, %v29_v0  ;;  %v49_v5 = vand.u32 4294901760, %v30_v1  ;;  %v32_v6 = vld [vmem:[%s1573_s1 + $0x18] sm:$0xff]  ;;  %v52_v7 = vand.u32 4294901760, %v31_v2  ;;  %v33_v9 = vld [vmem:[%s1573_s1 + $0x20] sm:$0xff]  ;;  %v34_v10 = vld [vmem:[%s1573_s1 + $0x28] sm:$0xff] }
  0x11   :  { %v55_v8 = vand.u32 4294901760, %v32_v6  ;;  %860 = vmatprep.mubr.msk.f32.mxu1 %vm1236_vm0, %v1237_v11  ;;  %965 = vmatprep.mubr.msk.f32.mxu0 %vm1236_vm0, %v1237_v11  ;;  %v58_v14 = vand.u32 4294901760, %v33_v9  ;;  %v61_v15 = vand.u32 4294901760, %v34_v10  ;;  %v35_v16 = vld [vmem:[%s1573_s1 + $0x30] sm:$0xff]  ;;  %v36_v17 = vld [vmem:[%s1573_s1 + $0x38] sm:$0xff]  ;;  %v1309_v21 = vld [vmem:[%s1573_s1 + $0x40] sm:$0xff] }
  0x12   :  { %v1286_v12 = vpack.c.bf16 %v49_v5, %v46_v4  ;;  %v64_v19 = vand.u32 4294901760, %v35_v16  ;;  %v67_v20 = vand.u32 4294901760, %v36_v17  ;;  %v1314_v22 = vld [vmem:[%s1573_s1 + $0x48] sm:$0xff]  ;;  %v70_v24 = vand.u32 4294901760, %v1309_v21  ;;  %v28_v26 = vld [vmem:[%s1572_s0] sm:$0x1] }
  0x13   :  { %v1290_v13 = vpack.c.bf16 %v55_v8, %v52_v7  ;;  %v1302_v18 = vpack.c.bf16 %v61_v15, %v58_v14  ;;  %v73_v25 = vand.u32 4294901760, %v1314_v22  ;;  %v1330_v27 = vld [vmem:[%s1573_s1 + $0x50] sm:$0xff]  ;;  %v1335_v28 = vld [vmem:[%s1573_s1 + $0x58] sm:$0xff]  ;;  %v1337_v29 = vsub.f32 %v29_v0, %v46_v4  ;;  %v1352_v35 = vld [vmem:[%s1573_s1 + $0x60] sm:$0xff]  ;;  %s725_s21 = sld [smem:[#allocation2 + $0x1]]  ;;  %s1238_s22 = smov [#allocation5]  }
  0x14   :  { %1040 = vmatpush3.bf16.msra.mxu1 %v1286_v12  ;;  %1112 = vmatpush3.bf16.msra.mxu0 %v1286_v12  ;;  %v1318_v23 = vpack.c.bf16 %v67_v20, %v64_v19  ;;  %v1339_v30 = vand.u32 4294901760, %v28_v26  ;;  %v1341_v31 = vsub.f32 %v30_v1, %v49_v5  ;;  %v76_v33 = vand.u32 4294901760, %v1330_v27  ;;  %v1359_v36 = vld [vmem:[%s1573_s1 + $0x68] sm:$0xff]  ;;  %v1381_v43 = vld [vmem:[%s1573_s1 + $0x70] sm:$0xff]  ;;  %v1386_v44 = vld [vmem:[%s1573_s1 + $0x78] sm:$0xff]  ;;  %s701_s1 = sld [smem:[#allocation2]] }
  0x15   :  { %1041 = vmatprep.subr.bf16.mxu1 %v1235_v3  ;;  %1113 = vmatprep.subr.bf16.mxu0 %v1235_v3  ;;  %v1345_v32 = vpack.c.bf16 %v73_v25, %v70_v24  ;;  %v79_v34 = vand.u32 4294901760, %v1335_v28  ;;  %v1361_v37 = vsub.f32 %v31_v2, %v52_v7  ;;  %v1363_v38 = vsub.f32 %v32_v6, %v55_v8  ;;  %s716_s23 = sshll.u32 %s1238_s22, 4  ;;  %s717_s23 = int_to_ptr.vmem [resolvable:$true] %s716_s23 }
  0x16   :  { %v82_v39 = vand.u32 4294901760, %v1352_v35  ;;  %v1367_v40 = vsub.f32 %v28_v26, %v1339_v30  ;;  %v85_v42 = vand.u32 4294901760, %v1359_v36  ;;  %v139_v45 = vand.u32 4294901760, %v1337_v29  ;;  %s1208_s24 = scalar_lea.vmem %s717_s23, 16  ;;  %s1212_s25 = scalar_lea.vmem %s717_s23, 32 }
  0x17   :  { %v1375_v41 = vpack.c.bf16 %v79_v34, %v76_v33  ;;  %v146_v46 = vand.u32 4294901760, %v1341_v31  ;;  %v1392_v47 = vsub.f32 %v33_v9, %v58_v14  ;;  %v1394_v48 = vsub.f32 %v34_v10, %v61_v15  ;;  %p1209_p5 = scmp.ne.s32.totalorder %s717_s23, %s1208_s24  ;;  %p1213_p6 = scmp.lt.s32.totalorder %s717_s23, %s717_s23 }
  0x18   :  { %1043 = vmatpush3.bf16.msra.mxu1 %v1290_v13  ;;  %1115 = vmatpush3.bf16.msra.mxu0 %v1290_v13  ;;  %v88_v49 = vand.u32 4294901760, %v1381_v43  ;;  %v91_v50 = vand.u32 4294901760, %v1386_v44  ;;  %v128_v51 = vand.u32 4294901760, %v1367_v40  ;;  %v153_v52 = vand.u32 4294901760, %v1361_v37  ;;  %p1214_p7 = scmp.lt.s32.totalorder %s1212_s25, %s1208_s24 }
  0x19   :  { %1044 = vmatprep.subr.bf16.mxu1 %v1235_v3  ;;  %1116 = vmatprep.subr.bf16.mxu0 %v1235_v3  ;;  %v1406_v53 = vpack.c.bf16 %v85_v42, %v82_v39  ;;  %v140_v54 = vsub.f32 %v1337_v29, %v139_v45  ;;  %v147_v55 = vsub.f32 %v1341_v31, %v146_v46  ;;  %v160_v56 = vand.u32 4294901760, %v1363_v38 }
  0x1a   :  { %v1413_v57 = vsub.f32 %v35_v16, %v64_v19  ;;  %v1415_v58 = vsub.f32 %v36_v17, %v67_v20  ;;  %v129_v59 = vsub.f32 %v1367_v40, %v128_v51  ;;  %v154_v60 = vsub.f32 %v1361_v37, %v153_v52  ;;  %p1215_p8 = por %p1214_p7, %p1213_p6 }
  0x1b   :  { %v167_v61 = vand.u32 4294901760, %v1392_v47  ;;  %v174_v62 = vand.u32 4294901760, %v1394_v48  ;;  %v1427_v63 = vpack.c.bf16 %v91_v50, %v88_v49  ;;  %v141_v0 = vand.u32 4294901760, %v140_v54 }
  0x1c   :  { %1046 = vmatpush3.bf16.msra.mxu1 %v1302_v18  ;;  %1118 = vmatpush3.bf16.msra.mxu0 %v1302_v18  ;;  %v148_v1 = vand.u32 4294901760, %v147_v55  ;;  %v161_v2 = vsub.f32 %v1363_v38, %v160_v56  ;;  %v1433_v4 = vsub.f32 %v1309_v21, %v70_v24  ;;  %v1436_v5 = vsub.f32 %v1314_v22, %v73_v25  ;;  %p1216_p9 = pnand %p1215_p8, %p1209_p5 }
  0x1d   :  { %1047 = vmatprep.subr.bf16.mxu1 %v1235_v3  ;;  %1119 = vmatprep.subr.bf16.mxu0 %v1235_v3  ;;  %v1135_v6 = vpack.c.bf16 %v146_v46, %v139_v45  ;;  %v130_v7 = vand.u32 4294901760, %v129_v59  ;;  %v155_v8 = vand.u32 4294901760, %v154_v60  ;;  %v168_v9 = vsub.f32 %v1392_v47, %v167_v61 }
  0x1e   :  { %v175_v10 = vsub.f32 %v1394_v48, %v174_v62  ;;  %v1063_v14 = vpack.c.bf16 %v148_v1, %v141_v0  ;;  %v162_v15 = vand.u32 4294901760, %v161_v2  ;;  %v181_v16 = vand.u32 4294901760, %v1413_v57 }
  0x1f   :  { %v188_v17 = vand.u32 4294901760, %v1415_v58  ;;  %v1449_v19 = vsub.f32 %v1330_v27, %v76_v33  ;;  %v1454_v20 = vsub.f32 %v1335_v28, %v79_v34  ;;  %v1138_v21 = vpack.c.bf16 %v160_v56, %v153_v52 }
  0x20   :  { %1049 = vmatpush3.bf16.msra.mxu1 %v1318_v23  ;;  %1121 = vmatpush3.bf16.msra.mxu0 %v1318_v23  ;;  %v169_v22 = vand.u32 4294901760, %v168_v9  ;;  %v176_v24 = vand.u32 4294901760, %v175_v10  ;;  %v195_v25 = vand.u32 4294901760, %v1433_v4  ;;  %v1066_v26 = vpack.c.bf16 %v162_v15, %v155_v8 }
  0x21   :  { %1050 = vmatprep.subr.bf16.mxu1 %v1235_v3  ;;  %1122 = vmatprep.subr.bf16.mxu0 %v1235_v3  ;;  %v182_v45 = vsub.f32 %v1413_v57, %v181_v16  ;;  %v189_v27 = vsub.f32 %v1415_v58, %v188_v17  ;;  %v202_v33 = vand.u32 4294901760, %v1436_v5  ;;  %v1465_v28 = vsub.f32 %v1352_v35, %v82_v39 }
  0x22   :  { %v1470_v34 = vsub.f32 %v1359_v36, %v85_v42  ;;  %v1069_v46 = vpack.c.bf16 %v176_v24, %v169_v22  ;;  %v196_v52 = vsub.f32 %v1433_v4, %v195_v25  ;;  %v209_v54 = vand.u32 4294901760, %v1449_v19 }
  0x23   :  { %v183_v35 = vand.u32 4294901760, %v182_v45  ;;  %v190_v39 = vand.u32 4294901760, %v189_v27  ;;  %v203_v55 = vsub.f32 %v1436_v5, %v202_v33  ;;  %v216_v36 = vand.u32 4294901760, %v1454_v20 }
  0x24   :  { %1052 = vmatpush3.bf16.msra.mxu1 %v1345_v32  ;;  %1124 = vmatpush3.bf16.msra.mxu0 %v1345_v32  ;;  %v1485_v42 = vsub.f32 %v1381_v43, %v88_v49  ;;  %v1490_v56 = vsub.f32 %v1386_v44, %v91_v50  ;;  %v1144_v59 = vpack.c.bf16 %v188_v17, %v181_v16  ;;  %v197_v60 = vand.u32 4294901760, %v196_v52 }
  0x25   :  { %1053 = vmatprep.subr.bf16.mxu1 %v1235_v3  ;;  %1125 = vmatprep.subr.bf16.mxu0 %v1235_v3  ;;  %v1072_v0 = vpack.c.bf16 %v190_v39, %v183_v35  ;;  %v204_v1 = vand.u32 4294901760, %v203_v55  ;;  %v217_v2 = vsub.f32 %v1454_v20, %v216_v36  ;;  %v230_v43 = vand.u32 4294901760, %v1470_v34 }
  0x26   :  { %v1147_v44 = vpack.c.bf16 %v202_v33, %v195_v25  ;;  %v244_v10 = vand.u32 4294901760, %v1490_v56  ;;  %vm708_vm2 = vcmask 122880  }
  0x27   :  { %v218_v8 = vand.u32 4294901760, %v217_v2  ;;  %v231_v9 = vsub.f32 %v1470_v34, %v230_v43 }
  0x28   :  { %1055 = vmatpush3.bf16.msra.mxu1 %v1375_v41  ;;  %1127 = vmatpush3.bf16.msra.mxu0 %v1375_v41  ;;  %v245_v22 = vsub.f32 %v1490_v56, %v244_v10 }
  0x29   :  { %1056 = vmatprep.subr.bf16.mxu1 %v1235_v3  ;;  %1128 = vmatprep.subr.bf16.mxu0 %v1235_v3  ;;  %v232_v17 = vand.u32 4294901760, %v231_v9 }
  0x2a   :  { %v246_v45 = vand.u32 4294901760, %v245_v22 }
  0x2c   :  { %1058 = vmatpush3.bf16.msra.mxu1 %v1406_v53  ;;  %1130 = vmatpush3.bf16.msra.mxu0 %v1406_v53 }
  0x2d   :  { %1059 = vmatprep.subr.bf16.mxu1 %v1235_v3  ;;  %1131 = vmatprep.subr.bf16.mxu0 %v1235_v3 }
  0x30   :  { %1061 = vmatpush3.bf16.msra.mxu1 %v1427_v63  ;;  %1133 = vmatpush3.bf16.msra.mxu0 %v1427_v63 }
  0x31   :  { %1062 = vmatprep.subr.bf16.mxu1 %v1235_v3  ;;  %1134 = vmatprep.subr.bf16.mxu0 %v1235_v3 }
  0x33   :  { %861 = vmatmul.mubr.f32.vlgmr.msra.gmra.mrb[0].mxu1 %v130_v7  ;;  %966 = vmatmul.mubr.f32.vlgmr.msra.gmra.mrb[0].mxu0 %v128_v51  ;;  %v1141_v51 = vpack.c.bf16 %v174_v62, %v167_v61  ;;  %v210_v61 = vsub.f32 %v1449_v19, %v209_v54  ;;  %v223_v62 = vand.u32 4294901760, %v1465_v28  ;;  %v1075_v7 = vpack.c.bf16 %v204_v1, %v197_v60 }
  0x34   :  { %1064 = vmatpush3.bf16.msra.mxu1 %v1063_v14  ;;  %1136 = vmatpush3.bf16.msra.mxu0 %v1135_v6  ;;  %v237_v6 = vand.u32 4294901760, %v1485_v42  ;;  %v1150_v14 = vpack.c.bf16 %v216_v36, %v209_v54 }
  0x35   :  { %1065 = vmatprep.subr.bf16.mxu1 %v1235_v3  ;;  %1137 = vmatprep.subr.bf16.mxu0 %v1235_v3  ;;  %v211_v49 = vand.u32 4294901760, %v210_v61  ;;  %v224_v50 = vsub.f32 %v1465_v28, %v223_v62  ;;  %v1153_v25 = vpack.c.bf16 %v230_v43, %v223_v62 }
  0x36   :  { %895 = vmatprep.mubr.msk.f32.mxu1 %vm1236_vm0, %v1237_v11  ;;  %1000 = vmatprep.mubr.msk.f32.mxu0 %vm1236_vm0, %v1237_v11  ;;  %v1156_v33 = vpack.c.bf16 %v244_v10, %v237_v6 }
  0x37   :  { %v225_v15 = vand.u32 4294901760, %v224_v50  ;;  %v1078_v16 = vpack.c.bf16 %v218_v8, %v211_v49 }
  0x38   :  { %1067 = vmatpush3.bf16.msra.mxu1 %v1066_v26  ;;  %1139 = vmatpush3.bf16.msra.mxu0 %v1138_v21  ;;  %v238_v21 = vsub.f32 %v1485_v42, %v237_v6 }
  0x39   :  { %1068 = vmatprep.subr.bf16.mxu1 %v1235_v3  ;;  %1140 = vmatprep.subr.bf16.mxu0 %v1235_v3  ;;  %v1081_v24 = vpack.c.bf16 %v232_v17, %v225_v15 }
  0x3a   :  { %v239_v26 = vand.u32 4294901760, %v238_v21 }
  0x3c   :  { %1070 = vmatpush3.bf16.msra.mxu1 %v1069_v46  ;;  %1142 = vmatpush3.bf16.msra.mxu0 %v1141_v51  ;;  %v1084_v27 = vpack.c.bf16 %v246_v45, %v239_v26  ;;  %v1087_v46 = vpack.c.bf16 %v1341_v31, %v1337_v29  ;;  %v1090_v51 = vpack.c.bf16 %v1363_v38, %v1361_v37  ;;  %v686_v31 = vlaneseq }
  0x3d   :  { %1071 = vmatprep.subr.bf16.mxu1 %v1235_v3  ;;  %1143 = vmatprep.subr.bf16.mxu0 %v1235_v3  ;;  %v1093_v29 = vpack.c.bf16 %v1394_v48, %v1392_v47  ;;  %v703_v38 = vstv %s701_s1 }
  0x40   :  { %1073 = vmatpush3.bf16.msra.mxu1 %v1072_v0  ;;  %1145 = vmatpush3.bf16.msra.mxu0 %v1144_v59 }
  0x41   :  { %1074 = vmatprep.subr.bf16.mxu1 %v1235_v3  ;;  %1146 = vmatprep.subr.bf16.mxu0 %v1235_v3 }
  0x44   :  { %1076 = vmatpush3.bf16.msra.mxu1 %v1075_v7  ;;  %1148 = vmatpush3.bf16.msra.mxu0 %v1147_v44 }
  0x45   :  { %1077 = vmatprep.subr.bf16.mxu1 %v1235_v3  ;;  %1149 = vmatprep.subr.bf16.mxu0 %v1235_v3 }
  0x48   :  { %1079 = vmatpush3.bf16.msra.mxu1 %v1078_v16  ;;  %1151 = vmatpush3.bf16.msra.mxu0 %v1150_v14 }
  0x49   :  { %1080 = vmatprep.subr.bf16.mxu1 %v1235_v3  ;;  %1152 = vmatprep.subr.bf16.mxu0 %v1235_v3 }
  0x4c   :  { %1082 = vmatpush3.bf16.msra.mxu1 %v1081_v24  ;;  %1154 = vmatpush3.bf16.msra.mxu0 %v1153_v25 }
  0x4d   :  { %1083 = vmatprep.subr.bf16.mxu1 %v1235_v3  ;;  %1155 = vmatprep.subr.bf16.mxu0 %v1235_v3 }
  0x50   :  { %1085 = vmatpush3.bf16.msra.mxu1 %v1084_v27  ;;  %1157 = vmatpush3.bf16.msra.mxu0 %v1156_v33 }
  0x51   :  { %1086 = vmatprep.subr.bf16.mxu1 %v1235_v3  ;;  %1158 = vmatprep.subr.bf16.mxu0 %v1235_v3 }
  0x53   :  { %896 = vmatmul.mubr.f32.vlgmr.msra.gmra.mrb[0].mxu1 %v1339_v30  ;;  %1001 = vmatmul.mubr.f32.vlgmr.msra.gmra.mrb[0].mxu0 %v1339_v30 }
  0x54   :  { %1088 = vmatpush3.bf16.msra.mxu1 %v1087_v46  ;;  %1160 = vmatpush3.bf16.msra.mxu0 %v1286_v12  ;;  %v1096_v12 = vpack.c.bf16 %v1415_v58, %v1413_v57 }
  0x55   :  { %1089 = vmatprep.subr.bf16.mxu1 %v1235_v3  ;;  %1161 = vmatprep.subr.bf16.mxu0 %v1235_v3 }
  0x56   :  { %930 = vmatprep.mubr.msk.f32.mxu1 %vm1236_vm0, %v1237_v11  ;;  %1035 = vmatprep.mubr.msk.f32.mxu0 %vm1236_vm0, %v1237_v11  ;;  %v1099_v11 = vpack.c.bf16 %v1436_v5, %v1433_v4 }
  0x58   :  { %1091 = vmatpush3.bf16.msra.mxu1 %v1090_v51  ;;  %1163 = vmatpush3.bf16.msra.mxu0 %v1290_v13  ;;  %v1102_v13 = vpack.c.bf16 %v1454_v20, %v1449_v19 }
  0x59   :  { %1092 = vmatprep.subr.bf16.mxu1 %v1235_v3  ;;  %1164 = vmatprep.subr.bf16.mxu0 %v1235_v3 }
  0x5c   :  { %1094 = vmatpush3.bf16.msra.mxu1 %v1093_v29  ;;  %1166 = vmatpush3.bf16.msra.mxu0 %v1302_v18  ;;  %v1105_v18 = vpack.c.bf16 %v1470_v34, %v1465_v28 }
  0x5d   :  { %1095 = vmatprep.subr.bf16.mxu1 %v1235_v3  ;;  %1167 = vmatprep.subr.bf16.mxu0 %v1235_v3 }
  0x60   :  { %1097 = vmatpush3.bf16.msra.mxu1 %v1096_v12  ;;  %1169 = vmatpush3.bf16.msra.mxu0 %v1318_v23  ;;  %v1108_v23 = vpack.c.bf16 %v1490_v56, %v1485_v42 }
  0x61   :  { %1098 = vmatprep.subr.bf16.mxu1 %v1235_v3  ;;  %1170 = vmatprep.subr.bf16.mxu0 %v1235_v3 }
  0x64   :  { %1100 = vmatpush3.bf16.msra.mxu1 %v1099_v11  ;;  %1172 = vmatpush3.bf16.msra.mxu0 %v1345_v32  ;;  %v687_v32 = vand.u32 127, %v686_v31 }
  0x65   :  { %1101 = vmatprep.subr.bf16.mxu1 %v1235_v3  ;;  %1173 = vmatprep.subr.bf16.mxu0 %v1235_v3 }
  0x66   :  { %v692_v37 = vand.u32 1, %v687_v32 }
  0x68   :  { %1103 = vmatpush3.bf16.msra.mxu1 %v1102_v13  ;;  %1175 = vmatpush3.bf16.msra.mxu0 %v1375_v41  ;;  %vm700_vm1 = vcmp.eq.s32.totalorder %v692_v37, 0  ;;  %v704_v41 = vstv %s725_s21 }
  0x69   :  { %1104 = vmatprep.subr.bf16.mxu1 %v1235_v3  ;;  %1176 = vmatprep.subr.bf16.mxu0 %v1235_v3 }
  0x6c   :  { %1106 = vmatpush3.bf16.msra.mxu1 %v1105_v18  ;;  %1178 = vmatpush3.bf16.msra.mxu0 %v1406_v53  ;;  %v705_v53 = vsel %vm700_vm1, %v703_v38, %v704_v41 }
  0x6d   :  { %1107 = vmatprep.subr.bf16.mxu1 %v1235_v3  ;;  %1179 = vmatprep.subr.bf16.mxu0 %v1235_v3 }
  0x70   :  { %1109 = vmatpush3.bf16.msra.mxu1 %v1108_v23  ;;  %1181 = vmatpush3.bf16.msra.mxu0 %v1427_v63 }
  0x73   :  { %931 = vmatmul.mubr.f32.vlgmr.msra.gmra.mrb[0].mxu1 %v1367_v40  ;;  %1036 = vmatmul.mubr.f32.vlgmr.msra.gmra.mrb[0].mxu0 %v1339_v30 }
 0x146   :  { %v387_v47 = vpop.f32.mrb[0].mxu1  ;;  %v682_v48 = vpop.f32.mrb[0].mxu0 }
 0x147   :  { %v1182_v57 = vadd.f32 %v682_v48, %v387_v47  ;;  %v932_v3 = vpop.f32.mrb[1].mxu1  ;;  %v1037_v58 = vpop.f32.mrb[1].mxu0 }
 0x149   :  { %v706_v63 = vmul.f32 %v1182_v57, %v705_v53 }
 0x14b   :  { %v707_v40 = vadd.f32 %v706_v63, %v705_v53 }
 0x14d   :  { %709 = vst.msk [vmem:[#allocation5] sm:$0x1] %vm708_vm2, %v707_v40 }
 0x14e   :  { %1219 = shalt.err (!%p1216_p9)
}
 0x14f   :  { %s1220_s28 = scalar_lea.hbm %s1575_s3, 16 }
 0x150   :  { %p1221_p10 = scmp.ne.s32.totalorder %s1575_s3, %s1220_s28  ;;  %p1224_p11 = scmp.lt.u32.totalorder %s1220_s28, %s1575_s3 }
 0x152   :  { %p1226_p12 = pnand %p1224_p11, %p1221_p10 }
 0x154   :  { %1229 = shalt.err (!%p1226_p12)
}
 0x155   :  { %719 = dma.vmem_to_hbm [thread:$0]  %s717_s23, 16, %s1575_s3, [#allocation3]  }
 0x156   :  { %1232 = dma.done.wait [#allocation3], 16  }
 0x157   :  { %1233 = vsyncadd [#allocation3], 4294967280 }
 0x158   :  { %723 = vsyncpa [#allocation3], 1 }
 0x159   :  { %724 = vsyncpa [#allocation4], 1 }

</bundles_post_ra>
